<compile_context>
chip_gen: v7x
topology: tpu7x:2x2x1
jax: 0.10.0
libtpu: 0.0.40
codegen_flags: <defaults>
</compile_context>

<pallas_src>
import functools

import jax
import jax.numpy as jnp
from jax.experimental import pallas as pl
from jax.experimental.pallas import tpu as pltpu

FLIP_PROB = 0.5
# PyTorch reference tests `rescale(U) < FLIP_PROB`, i.e. `2U - 1 < 0.5` <=> `U < 0.75`.
_FLIP_U_THRESHOLD = (FLIP_PROB + 1.0) * 0.5


def _hopfield_train_kernel(w_ref, x_ref, starts_ref, noise_ref, flipu_ref,
                           out_ref, *, num_iters, inv_batch, inv_samples,
                           inv_units):
    w = w_ref[...]                       # (N, N) symmetric, zero diagonal, f32
    # bf16 is the fast MXU path on v6e/v7x; vals are exact +-1 and fields only
    # feed a sign test against stochastic noise, so the cast is benign.  All
    # elementwise / noise math stays in f32 (v5e has no bf16 VPU/EUP).
    w_bf = w.astype(jnp.bfloat16)
    vals = starts_ref[...]               # (S, N) +-1 spins, kept in f32

    # StochasticHopfieldNet.run_iters: negative-phase stochastic relaxation.
    for i in range(num_iters):
        # compute_fields: fields = vals @ W.T == vals @ W (W is symmetric,
        # so no transpose on the per-iteration critical path).
        fields = jnp.dot(vals.astype(jnp.bfloat16), w_bf,
                         preferred_element_type=jnp.float32)
        # noisy_fields: fields + (add_noise - sub_noise) * temperature, with
        # the noise precomputed in the wrapper (independent of vals).
        noisy = fields + noise_ref[i]
        # _update: flip where (vals * field < 0) and (rescale(U) < FLIP_PROB),
        # collapsed into a single select.
        flip = jnp.logical_and(vals * noisy < 0.0,
                               flipu_ref[i] < _FLIP_U_THRESHOLD)
        vals = jnp.where(flip, -vals, vals)

    # Contrastive objective.  For symmetric W:
    #   sum(W o (A^T A)) == sum((A @ W) o A)
    # which avoids forming the two (N, N) Gram intermediates and the explicit
    # transposes, and shrinks the final cross-lane reduce to (B+S) x N.
    x = x_ref[...]                       # (B, N)
    pos = jnp.sum(jnp.dot(x, w, preferred_element_type=jnp.float32) * x) * inv_batch
    neg = jnp.sum(jnp.dot(vals, w, preferred_element_type=jnp.float32) * vals) * inv_samples
    result = (neg - pos) * inv_units     # == sum(W * -(pos_gram - neg_gram)) / N
    # `if result < 0: return result * 0 else: return result`
    out_ref[0] = jnp.where(result < 0.0, 0.0, result)


def stochastic_hopfield_train_forward(weights, in_vals, key, *,
                                      num_rand_samples, num_rand_sample_iters,
                                      temperature):
    num_units = weights.shape[0]
    batch_size = in_vals.shape[0]

    # fix_weights(): symmetrize and zero the diagonal (parameter glue).
    mask = 1.0 - jnp.eye(num_units, dtype=weights.dtype)
    w_fixed = mask * ((weights + weights.T) * 0.5)

    # TODO(synk): torch.rand / uniform_ RNG streams cannot be bit-matched;
    # all random draws use jax.random and are passed into the kernel precomputed.
    k_start, k_add, k_sub, k_flip = jax.random.split(key, 4)

    # rand_starts = discretize(rescale(rand)) -> +-1 spins.
    rand_starts = jnp.where(
        jax.random.uniform(k_start, (num_rand_samples, num_units)) > 0.5,
        1.0, -1.0).astype(jnp.float32)

    noise_shape = (num_rand_sample_iters, num_rand_samples, num_units)
    u_add = jax.random.uniform(k_add, noise_shape, minval=1e-20, maxval=1.0)
    u_sub = jax.random.uniform(k_sub, noise_shape, minval=1e-20, maxval=1.0)
    # (add_noise - sub_noise) * temperature with add = -log(u_add), sub = -log(u_sub).
    noise = ((jnp.log(u_sub) - jnp.log(u_add)) * temperature).astype(jnp.float32)
    flip_u = jax.random.uniform(k_flip, noise_shape, dtype=jnp.float32)

    kernel = functools.partial(
        _hopfield_train_kernel,
        num_iters=int(num_rand_sample_iters),
        inv_batch=1.0 / float(batch_size),
        inv_samples=1.0 / float(num_rand_samples),
        inv_units=1.0 / float(num_units),
    )

    out = pl.pallas_call(
        kernel,
        out_shape=jax.ShapeDtypeStruct((1,), jnp.float32),
        in_specs=[
            pl.BlockSpec(memory_space=pltpu.MemorySpace.VMEM),   # weights (N, N)
            pl.BlockSpec(memory_space=pltpu.MemorySpace.VMEM),   # in_vals (B, N)
            pl.BlockSpec(memory_space=pltpu.MemorySpace.VMEM),   # starts  (S, N)
            pl.BlockSpec(memory_space=pltpu.MemorySpace.VMEM),   # noise   (T, S, N)
            pl.BlockSpec(memory_space=pltpu.MemorySpace.VMEM),   # flip_u  (T, S, N)
        ],
        out_specs=pl.BlockSpec(memory_space=pltpu.MemorySpace.SMEM),
    )(w_fixed, in_vals, rand_starts, noise, flip_u)
    return out[0]


if __name__ == "__main__":
    # Small, module-consistent shapes.
    num_units = 128           # Hopfield units (lane-dense last dim)
    batch_size = 4            # in_vals batch
    num_rand_samples = 8      # negative-phase samples
    num_rand_sample_iters = 4
    temperature = 0.1

    key = jax.random.PRNGKey(0)
    kw, kx, kr = jax.random.split(key, 3)

    # StochasticHopfieldNet.__init__ + init_weights: xavier_normal on (N, N).
    xavier_std = (2.0 / (num_units + num_units)) ** 0.5
    weights = (xavier_std * jax.random.normal(kw, (num_units, num_units))).astype(jnp.float32)
    in_vals = jnp.where(jax.random.uniform(kx, (batch_size, num_units)) > 0.5,
                        1.0, -1.0).astype(jnp.float32)

    result = stochastic_hopfield_train_forward(
        weights, in_vals, kr,
        num_rand_samples=num_rand_samples,
        num_rand_sample_iters=num_rand_sample_iters,
        temperature=temperature,
    )
    result = jax.block_until_ready(result)
    assert result.shape == () and bool(jnp.isfinite(result))
    print("KERNEL_OK")
</pallas_src>

<mosaic_0001>
module attributes {stable_mosaic.version = 11 : i64} {
  func.func @_hopfield_train_kernel(%arg0: memref<128x128xf32, #tpu.memory_space<vmem>>, %arg1: memref<4x128xf32, #tpu.memory_space<vmem>>, %arg2: memref<8x128xf32, #tpu.memory_space<vmem>>, %arg3: memref<4x8x128xf32, #tpu.memory_space<vmem>>, %arg4: memref<4x8x128xf32, #tpu.memory_space<vmem>>, %arg5: memref<1xf32, #tpu.memory_space<smem>>) attributes {dimension_semantics = [], scalar_prefetch = 0 : i64, scratch_operands = 0 : i64, tpu.core_type = #tpu.core_type<tc>} {
    %c0 = arith.constant 0 : index
    %c0_0 = arith.constant 0 : index
    %0 = vector.load %arg0[%c0, %c0_0] : memref<128x128xf32, #tpu.memory_space<vmem>>, vector<128x128xf32>
    %1 = arith.truncf %0 : vector<128x128xf32> to vector<128x128xbf16>
    %c0_1 = arith.constant 0 : index
    %c0_2 = arith.constant 0 : index
    %2 = vector.load %arg2[%c0_1, %c0_2] : memref<8x128xf32, #tpu.memory_space<vmem>>, vector<8x128xf32>
    %3 = arith.truncf %2 : vector<8x128xf32> to vector<8x128xbf16>
    %cst = arith.constant dense<0.000000e+00> : vector<8x128xf32>
    %4 = tpu.matmul %3, %1, %cst {dimension_numbers = #tpu.dot_dimension_numbers<[1], [0], [0], [1], [0, 0, 1, 1], [], []>} : vector<8x128xbf16>, vector<128x128xbf16>, vector<8x128xf32> -> vector<8x128xf32>
    %c0_3 = arith.constant 0 : index
    %c0_4 = arith.constant 0 : index
    %c0_5 = arith.constant 0 : index
    %5 = vector.load %arg3[%c0_3, %c0_4, %c0_5] : memref<4x8x128xf32, #tpu.memory_space<vmem>>, vector<1x8x128xf32>
    %6 = vector.shape_cast %5 : vector<1x8x128xf32> to vector<8x128xf32>
    %7 = arith.addf %4, %6 : vector<8x128xf32>
    %8 = arith.mulf %2, %7 : vector<8x128xf32>
    %cst_6 = arith.constant 0.000000e+00 : f32
    %9 = vector.broadcast %cst_6 : f32 to vector<8x128xf32>
    %10 = arith.cmpf olt, %8, %9 : vector<8x128xf32>
    %c0_7 = arith.constant 0 : index
    %c0_8 = arith.constant 0 : index
    %c0_9 = arith.constant 0 : index
    %11 = vector.load %arg4[%c0_7, %c0_8, %c0_9] : memref<4x8x128xf32, #tpu.memory_space<vmem>>, vector<1x8x128xf32>
    %12 = vector.shape_cast %11 : vector<1x8x128xf32> to vector<8x128xf32>
    %cst_10 = arith.constant 7.500000e-01 : f32
    %13 = vector.broadcast %cst_10 : f32 to vector<8x128xf32>
    %14 = arith.cmpf olt, %12, %13 : vector<8x128xf32>
    %15 = arith.andi %10, %14 : vector<8x128xi1>
    %cst_11 = arith.constant 0.000000e+00 : f32
    %16 = vector.broadcast %cst_11 : f32 to vector<8x128xf32>
    %17 = arith.subf %16, %2 : vector<8x128xf32>
    %18 = arith.select %15, %17, %2 : vector<8x128xi1>, vector<8x128xf32>
    %19 = arith.truncf %18 : vector<8x128xf32> to vector<8x128xbf16>
    %cst_12 = arith.constant dense<0.000000e+00> : vector<8x128xf32>
    %20 = tpu.matmul %19, %1, %cst_12 {dimension_numbers = #tpu.dot_dimension_numbers<[1], [0], [0], [1], [0, 0, 1, 1], [], []>} : vector<8x128xbf16>, vector<128x128xbf16>, vector<8x128xf32> -> vector<8x128xf32>
    %c1 = arith.constant 1 : index
    %c0_13 = arith.constant 0 : index
    %c0_14 = arith.constant 0 : index
    %21 = vector.load %arg3[%c1, %c0_13, %c0_14] : memref<4x8x128xf32, #tpu.memory_space<vmem>>, vector<1x8x128xf32>
    %22 = vector.shape_cast %21 : vector<1x8x128xf32> to vector<8x128xf32>
    %23 = arith.addf %20, %22 : vector<8x128xf32>
    %24 = arith.mulf %18, %23 : vector<8x128xf32>
    %cst_15 = arith.constant 0.000000e+00 : f32
    %25 = vector.broadcast %cst_15 : f32 to vector<8x128xf32>
    %26 = arith.cmpf olt, %24, %25 : vector<8x128xf32>
    %c1_16 = arith.constant 1 : index
    %c0_17 = arith.constant 0 : index
    %c0_18 = arith.constant 0 : index
    %27 = vector.load %arg4[%c1_16, %c0_17, %c0_18] : memref<4x8x128xf32, #tpu.memory_space<vmem>>, vector<1x8x128xf32>
    %28 = vector.shape_cast %27 : vector<1x8x128xf32> to vector<8x128xf32>
    %cst_19 = arith.constant 7.500000e-01 : f32
    %29 = vector.broadcast %cst_19 : f32 to vector<8x128xf32>
    %30 = arith.cmpf olt, %28, %29 : vector<8x128xf32>
    %31 = arith.andi %26, %30 : vector<8x128xi1>
    %cst_20 = arith.constant 0.000000e+00 : f32
    %32 = vector.broadcast %cst_20 : f32 to vector<8x128xf32>
    %33 = arith.subf %32, %18 : vector<8x128xf32>
    %34 = arith.select %31, %33, %18 : vector<8x128xi1>, vector<8x128xf32>
    %35 = arith.truncf %34 : vector<8x128xf32> to vector<8x128xbf16>
    %cst_21 = arith.constant dense<0.000000e+00> : vector<8x128xf32>
    %36 = tpu.matmul %35, %1, %cst_21 {dimension_numbers = #tpu.dot_dimension_numbers<[1], [0], [0], [1], [0, 0, 1, 1], [], []>} : vector<8x128xbf16>, vector<128x128xbf16>, vector<8x128xf32> -> vector<8x128xf32>
    %c2 = arith.constant 2 : index
    %c0_22 = arith.constant 0 : index
    %c0_23 = arith.constant 0 : index
    %37 = vector.load %arg3[%c2, %c0_22, %c0_23] : memref<4x8x128xf32, #tpu.memory_space<vmem>>, vector<1x8x128xf32>
    %38 = vector.shape_cast %37 : vector<1x8x128xf32> to vector<8x128xf32>
    %39 = arith.addf %36, %38 : vector<8x128xf32>
    %40 = arith.mulf %34, %39 : vector<8x128xf32>
    %cst_24 = arith.constant 0.000000e+00 : f32
    %41 = vector.broadcast %cst_24 : f32 to vector<8x128xf32>
    %42 = arith.cmpf olt, %40, %41 : vector<8x128xf32>
    %c2_25 = arith.constant 2 : index
    %c0_26 = arith.constant 0 : index
    %c0_27 = arith.constant 0 : index
    %43 = vector.load %arg4[%c2_25, %c0_26, %c0_27] : memref<4x8x128xf32, #tpu.memory_space<vmem>>, vector<1x8x128xf32>
    %44 = vector.shape_cast %43 : vector<1x8x128xf32> to vector<8x128xf32>
    %cst_28 = arith.constant 7.500000e-01 : f32
    %45 = vector.broadcast %cst_28 : f32 to vector<8x128xf32>
    %46 = arith.cmpf olt, %44, %45 : vector<8x128xf32>
    %47 = arith.andi %42, %46 : vector<8x128xi1>
    %cst_29 = arith.constant 0.000000e+00 : f32
    %48 = vector.broadcast %cst_29 : f32 to vector<8x128xf32>
    %49 = arith.subf %48, %34 : vector<8x128xf32>
    %50 = arith.select %47, %49, %34 : vector<8x128xi1>, vector<8x128xf32>
    %51 = arith.truncf %50 : vector<8x128xf32> to vector<8x128xbf16>
    %cst_30 = arith.constant dense<0.000000e+00> : vector<8x128xf32>
    %52 = tpu.matmul %51, %1, %cst_30 {dimension_numbers = #tpu.dot_dimension_numbers<[1], [0], [0], [1], [0, 0, 1, 1], [], []>} : vector<8x128xbf16>, vector<128x128xbf16>, vector<8x128xf32> -> vector<8x128xf32>
    %c3 = arith.constant 3 : index
    %c0_31 = arith.constant 0 : index
    %c0_32 = arith.constant 0 : index
    %53 = vector.load %arg3[%c3, %c0_31, %c0_32] : memref<4x8x128xf32, #tpu.memory_space<vmem>>, vector<1x8x128xf32>
    %54 = vector.shape_cast %53 : vector<1x8x128xf32> to vector<8x128xf32>
    %55 = arith.addf %52, %54 : vector<8x128xf32>
    %56 = arith.mulf %50, %55 : vector<8x128xf32>
    %cst_33 = arith.constant 0.000000e+00 : f32
    %57 = vector.broadcast %cst_33 : f32 to vector<8x128xf32>
    %58 = arith.cmpf olt, %56, %57 : vector<8x128xf32>
    %c3_34 = arith.constant 3 : index
    %c0_35 = arith.constant 0 : index
    %c0_36 = arith.constant 0 : index
    %59 = vector.load %arg4[%c3_34, %c0_35, %c0_36] : memref<4x8x128xf32, #tpu.memory_space<vmem>>, vector<1x8x128xf32>
    %60 = vector.shape_cast %59 : vector<1x8x128xf32> to vector<8x128xf32>
    %cst_37 = arith.constant 7.500000e-01 : f32
    %61 = vector.broadcast %cst_37 : f32 to vector<8x128xf32>
    %62 = arith.cmpf olt, %60, %61 : vector<8x128xf32>
    %63 = arith.andi %58, %62 : vector<8x128xi1>
    %cst_38 = arith.constant 0.000000e+00 : f32
    %64 = vector.broadcast %cst_38 : f32 to vector<8x128xf32>
    %65 = arith.subf %64, %50 : vector<8x128xf32>
    %66 = arith.select %63, %65, %50 : vector<8x128xi1>, vector<8x128xf32>
    %c0_39 = arith.constant 0 : index
    %c0_40 = arith.constant 0 : index
    %67 = vector.load %arg1[%c0_39, %c0_40] : memref<4x128xf32, #tpu.memory_space<vmem>>, vector<4x128xf32>
    %cst_41 = arith.constant dense<0.000000e+00> : vector<4x128xf32>
    %68 = tpu.matmul %67, %0, %cst_41 {dimension_numbers = #tpu.dot_dimension_numbers<[1], [0], [0], [1], [0, 0, 1, 1], [], []>} : vector<4x128xf32>, vector<128x128xf32>, vector<4x128xf32> -> vector<4x128xf32>
    %69 = arith.mulf %68, %67 : vector<4x128xf32>
    %70 = vector.shape_cast %69 : vector<4x128xf32> to vector<1x4x128xf32>
    %cst_42 = arith.constant dense<0.000000e+00> : vector<1xf32>
    %71 = vector.multi_reduction <add>, %70, %cst_42 [1, 2] : vector<1x4x128xf32> to vector<1xf32>
    %72 = vector.shape_cast %71 : vector<1xf32> to vector<1x1x1xf32>
    %73 = vector.extract %72[0, 0, 0] : f32 from vector<1x1x1xf32>
    %cst_43 = arith.constant 2.500000e-01 : f32
    %74 = arith.mulf %73, %cst_43 : f32
    %cst_44 = arith.constant dense<0.000000e+00> : vector<8x128xf32>
    %75 = tpu.matmul %66, %0, %cst_44 {dimension_numbers = #tpu.dot_dimension_numbers<[1], [0], [0], [1], [0, 0, 1, 1], [], []>} : vector<8x128xf32>, vector<128x128xf32>, vector<8x128xf32> -> vector<8x128xf32>
    %76 = arith.mulf %75, %66 : vector<8x128xf32>
    %77 = vector.shape_cast %76 : vector<8x128xf32> to vector<1x8x128xf32>
    %cst_45 = arith.constant dense<0.000000e+00> : vector<1xf32>
    %78 = vector.multi_reduction <add>, %77, %cst_45 [1, 2] : vector<1x8x128xf32> to vector<1xf32>
    %79 = vector.shape_cast %78 : vector<1xf32> to vector<1x1x1xf32>
    %80 = vector.extract %79[0, 0, 0] : f32 from vector<1x1x1xf32>
    %cst_46 = arith.constant 1.250000e-01 : f32
    %81 = arith.mulf %80, %cst_46 : f32
    %82 = arith.subf %81, %74 : f32
    %cst_47 = arith.constant 7.812500e-03 : f32
    %83 = arith.mulf %82, %cst_47 : f32
    %cst_48 = arith.constant 0.000000e+00 : f32
    %84 = arith.cmpf olt, %83, %cst_48 : f32
    %cst_49 = arith.constant 0.000000e+00 : f32
    %85 = arith.select %84, %cst_49, %83 : f32
    %c0_50 = arith.constant 0 : index
    %86 = memref.load %arg5[%c0_50] : memref<1xf32, #tpu.memory_space<smem>>
    memref.store %85, %arg5[%c0_50] : memref<1xf32, #tpu.memory_space<smem>>
    return
  }
}

</mosaic_0001>

<bundles_post_ra>
// kernel: tpu_custom_call.1
= control target key start
LH: loop header
LB: loop body
LE: loop exit
PB: predicated region body
PF: predicated region fallthrough
CT: control target
= control target key end

     0   :  { %10 = vsyncpa [#allocation3], 0  ;;  %s1141_s0 = inlined_call_operand.hbm [shape: f32[128,128], index: 0, kind: input, shape index: {}]   ;;  %s1142_s1 = inlined_call_operand.hbm [shape: f32[4,128], index: 1, kind: input, shape index: {}]   ;;  %s1143_s2 = inlined_call_operand.hbm [shape: f32[8,128], index: 2, kind: input, shape index: {}]   ;;  %s1144_s3 = inlined_call_operand.hbm [shape: f32[4,8,128], index: 3, kind: input, shape index: {}]   ;;  %s1145_s4 = inlined_call_operand.hbm [shape: f32[4,8,128], index: 4, kind: input, shape index: {}]   ;;  %s1146_s5 = inlined_call_operand.hbm [shape: f32[1], index: 5, kind: output, shape index: {}]  }
   0x1   :  { %11 = vsyncpa [#allocation6], 0 }
   0x2   :  { %12 = vsyncpa [#allocation9], 0 }
   0x3   :  { %13 = vsyncpa [#allocation4], 0  ;;  %s911_s18 = smov [#allocation5]   ;;  %s783_s22 = scalar_lea.hbm %s1142_s1, 64 }
   0x4   :  { %s32_s19 = sshll.u32 %s911_s18, 4  ;;  %p784_p0 = scmp.ne.s32.totalorder %s1142_s1, %s783_s22  ;;  %s33_s19 = int_to_ptr.vmem [resolvable:$true] %s32_s19 }
   0x5   :  { %p787_p1 = scmp.lt.u32.totalorder %s783_s22, %s1142_s1 }
   0x7   :  { %p789_p2 = pnand %p787_p1, %p784_p0 }
   0x9   :  { %792 = shalt.err (!%p789_p2)
}
   0xa   :  { %s793_s27 = scalar_lea.vmem %s33_s19, 64  ;;  %p798_p4 = scmp.lt.s32.totalorder %s33_s19, %s33_s19 }
   0xb   :  { %p794_p3 = scmp.ne.s32.totalorder %s33_s19, %s793_s27  ;;  %p799_p5 = scmp.lt.s32.totalorder %s793_s27, %s793_s27 }
   0xd   :  { %p800_p6 = por %p799_p5, %p798_p4 }
   0xf   :  { %p801_p7 = pnand %p800_p6, %p794_p3 }
  0x11   :  { %804 = shalt.err (!%p801_p7)
}
  0x12   :  { %35 = dma.hbm_to_vmem [thread:$0]  %s1142_s1, 64, %s33_s19, [#allocation6]  }
  0x13   :  { %s912_s30 = smov [#allocation8]   ;;  %s913_s7 = smov [#allocation2]  }
  0x14   :  { %s51_s6 = sshll.u32 %s912_s30, 4  ;;  %s19_s8 = sshll.u32 %s913_s7, 4  ;;  %s52_s6 = int_to_ptr.vmem [resolvable:$true] %s51_s6  ;;  %s20_s8 = int_to_ptr.vmem [resolvable:$true] %s19_s8 }
  0x15   :  { %s805_s11 = scalar_lea.hbm %s1144_s3, 512 }
  0x16   :  { %p806_p8 = scmp.ne.s32.totalorder %s1144_s3, %s805_s11  ;;  %p809_p9 = scmp.lt.u32.totalorder %s805_s11, %s1144_s3 }
  0x18   :  { %p811_p10 = pnand %p809_p9, %p806_p8 }
  0x1a   :  { %814 = shalt.err (!%p811_p10)
}
  0x1b   :  { %s815_s1 = scalar_lea.vmem %s52_s6, 512  ;;  %p820_p12 = scmp.lt.s32.totalorder %s52_s6, %s52_s6 }
  0x1c   :  { %p816_p11 = scmp.ne.s32.totalorder %s52_s6, %s815_s1  ;;  %p821_p13 = scmp.lt.s32.totalorder %s815_s1, %s815_s1 }
  0x1e   :  { %p822_p0 = por %p821_p13, %p820_p12 }
  0x20   :  { %p823_p1 = pnand %p822_p0, %p816_p11 }
  0x22   :  { %826 = shalt.err (!%p823_p1)
}
  0x23   :  { %s914_s16 = smov 128   ;;  %s915_s17 = smov 8  }
  0x24   :  { %57 = dma.hbm_to_vmem [thread:$0]  %s1144_s3, 512, %s52_s6, [#allocation9], %s914_s16, %s914_s16, %s915_s17  }
  0x25   :  { %s827_s22 = scalar_lea.hbm %s1141_s0, 2048 }
  0x26   :  { %p828_p2 = scmp.ne.s32.totalorder %s1141_s0, %s827_s22  ;;  %p831_p3 = scmp.lt.u32.totalorder %s827_s22, %s1141_s0 }
  0x28   :  { %p833_p4 = pnand %p831_p3, %p828_p2 }
  0x2a   :  { %836 = shalt.err (!%p833_p4)
}
  0x2b   :  { %s837_s27 = scalar_lea.vmem %s20_s8, 2048  ;;  %p842_p6 = scmp.lt.s32.totalorder %s20_s8, %s20_s8 }
  0x2c   :  { %p838_p5 = scmp.ne.s32.totalorder %s20_s8, %s837_s27  ;;  %p843_p7 = scmp.lt.s32.totalorder %s837_s27, %s837_s27 }
  0x2e   :  { %p844_p8 = por %p843_p7, %p842_p6 }
  0x30   :  { %p845_p9 = pnand %p844_p8, %p838_p5 }
  0x32   :  { %848 = shalt.err (!%p845_p9)
}
  0x33   :  { %25 = dma.hbm_to_vmem [thread:$0]  %s1141_s0, 2048, %s20_s8, [#allocation3], %s914_s16, %s914_s16, %s915_s17  }
  0x34   :  { %s916_s29 = smov [#allocation7]   ;;  %s917_s6 = smov [#allocation10]  }
  0x35   :  { %s42_s30 = sshll.u32 %s916_s29, 4  ;;  %s63_s7 = sshll.u32 %s917_s6, 4  ;;  %s43_s30 = int_to_ptr.vmem [resolvable:$true] %s42_s30  ;;  %s64_s7 = int_to_ptr.vmem [resolvable:$true] %s63_s7 }
  0x36   :  { %s849_s11 = scalar_lea.hbm %s1143_s2, 128 }
  0x37   :  { %p850_p10 = scmp.ne.s32.totalorder %s1143_s2, %s849_s11  ;;  %p853_p11 = scmp.lt.u32.totalorder %s849_s11, %s1143_s2 }
  0x39   :  { %p855_p12 = pnand %p853_p11, %p850_p10 }
  0x3b   :  { %858 = shalt.err (!%p855_p12)
}
  0x3c   :  { %s859_s0 = scalar_lea.vmem %s43_s30, 128  ;;  %p864_p0 = scmp.lt.s32.totalorder %s43_s30, %s43_s30 }
  0x3d   :  { %p860_p13 = scmp.ne.s32.totalorder %s43_s30, %s859_s0  ;;  %p865_p1 = scmp.lt.s32.totalorder %s859_s0, %s859_s0 }
  0x3f   :  { %p866_p2 = por %p865_p1, %p864_p0 }
  0x41   :  { %p867_p3 = pnand %p866_p2, %p860_p13 }
  0x43   :  { %870 = shalt.err (!%p867_p3)
}
  0x44   :  { %45 = dma.hbm_to_vmem [thread:$0]  %s1143_s2, 128, %s43_s30, [#allocation6]  }
  0x45   :  { %s871_s20 = scalar_lea.hbm %s1145_s4, 512 }
  0x46   :  { %p872_p4 = scmp.ne.s32.totalorder %s1145_s4, %s871_s20  ;;  %p875_p5 = scmp.lt.u32.totalorder %s871_s20, %s1145_s4 }
  0x48   :  { %p877_p6 = pnand %p875_p5, %p872_p4 }
  0x4a   :  { %880 = shalt.err (!%p877_p6)
}
  0x4b   :  { %s881_s25 = scalar_lea.vmem %s64_s7, 512  ;;  %p886_p8 = scmp.lt.s32.totalorder %s64_s7, %s64_s7 }
  0x4c   :  { %p882_p7 = scmp.ne.s32.totalorder %s64_s7, %s881_s25  ;;  %p887_p9 = scmp.lt.s32.totalorder %s881_s25, %s881_s25 }
  0x4e   :  { %p888_p10 = por %p887_p9, %p886_p8 }
  0x50   :  { %p889_p11 = pnand %p888_p10, %p882_p7 }
  0x52   :  { %892 = shalt.err (!%p889_p11)
}
  0x53   :  { %69 = dma.hbm_to_vmem [thread:$0]  %s1145_s4, 512, %s64_s7, [#allocation9], %s914_s16, %s914_s16, %s915_s17  }
  0x54   :  { %903 = dma.done.wait [#allocation3], 2048  }
  0x55   :  { %904 = vsyncadd [#allocation3], 4294965248 }
  0x56   :  { %905 = dma.done.wait [#allocation6], 192  }
  0x57   :  { %906 = vsyncadd [#allocation6], 4294967104 }
  0x58   :  { %907 = dma.done.wait [#allocation9], 1024  }
  0x59   :  { %908 = vsyncadd [#allocation9], 4294966272  ;;  %v918_v0 = vmov 0.0   ;;  %vm919_vm0 = vmmov 0   ;;  %v86_v1 = vld [vmem:[#allocation2] sm:$0xff]  ;;  %v87_v2 = vld [vmem:[#allocation2 + $0x8] sm:$0xff] }
  0x5a   :  { %570 = vmatprep.subr.bf16.mxu0 %v918_v0  ;;  %586 = vmatprep.mubr.msk.bf16.mxu0 %vm919_vm0, %v918_v0  ;;  %v88_v3 = vld [vmem:[#allocation2 + $0x10] sm:$0xff]  ;;  %v1027_v4 = vpack.c.bf16 %v87_v2, %v86_v1  ;;  %v89_v5 = vld [vmem:[#allocation2 + $0x18] sm:$0xff]  ;;  %v90_v7 = vld [vmem:[#allocation2 + $0x20] sm:$0xff]  ;;  %v920_v49 = vmov 0.0|0.0   ;;  %vm385_vm10 = vcmask 1043456   ;;  %s893_s6 = scalar_lea.hbm %s1146_s5, 16 }
  0x5b   :  { %590 = vmatprep.subr.bf16.mxu1 %v918_v0  ;;  %606 = vmatprep.mubr.msk.bf16.mxu1 %vm919_vm0, %v918_v0  ;;  %v1030_v6 = vpack.c.bf16 %v89_v5, %v88_v3  ;;  %v91_v8 = vld [vmem:[#allocation2 + $0x28] sm:$0xff]  ;;  %v92_v10 = vld [vmem:[#allocation2 + $0x30] sm:$0xff]  ;;  %v93_v11 = vld [vmem:[#allocation2 + $0x38] sm:$0xff]  ;;  %p894_p13 = scmp.ne.s32.totalorder %s1146_s5, %s893_s6  ;;  %p897_p0 = scmp.lt.u32.totalorder %s893_s6, %s1146_s5 }
  0x5c   :  { %571 = vmatpush3.bf16.msra.mxu0 %v1027_v4  ;;  %591 = vmatpush3.bf16.msra.mxu1 %v1027_v4  ;;  %v1036_v9 = vpack.c.bf16 %v91_v8, %v90_v7  ;;  %v1042_v12 = vpack.c.bf16 %v93_v11, %v92_v10  ;;  %v94_v13 = vld [vmem:[#allocation2 + $0x40] sm:$0xff]  ;;  %v95_v14 = vld [vmem:[#allocation2 + $0x48] sm:$0xff]  ;;  %v96_v16 = vld [vmem:[#allocation2 + $0x50] sm:$0xff] }
  0x5d   :  { %572 = vmatprep.subr.bf16.mxu0 %v918_v0  ;;  %592 = vmatprep.subr.bf16.mxu1 %v918_v0  ;;  %v1048_v15 = vpack.c.bf16 %v95_v14, %v94_v13  ;;  %v97_v17 = vld [vmem:[#allocation2 + $0x58] sm:$0xff]  ;;  %v98_v19 = vld [vmem:[#allocation2 + $0x60] sm:$0xff]  ;;  %v99_v20 = vld [vmem:[#allocation2 + $0x68] sm:$0xff]  ;;  %p899_p1 = pnand %p897_p0, %p894_p13 }
  0x5e   :  { %v1054_v18 = vpack.c.bf16 %v97_v17, %v96_v16  ;;  %v1060_v21 = vpack.c.bf16 %v99_v20, %v98_v19  ;;  %v100_v22 = vld [vmem:[#allocation2 + $0x70] sm:$0xff]  ;;  %v101_v23 = vld [vmem:[#allocation2 + $0x78] sm:$0xff]  ;;  %v110_v25 = vld [vmem:[#allocation7] sm:$0xff] }
  0x5f   :  { %v1066_v24 = vpack.c.bf16 %v101_v23, %v100_v22  ;;  %v111_v26 = vpack.c.bf16 %v110_v25, %v110_v25  ;;  %v112_v27 = vld [vmem:[#allocation8] sm:$0xff]  ;;  %v158_v34 = vsub.f32 0.0, %v110_v25  ;;  %v162_v38 = vld [vmem:[#allocation8 + $0x8] sm:$0xff]  ;;  %v313_v50 = vld [vmem:[#allocation5] sm:$0xf] }
  0x60   :  { %573 = vmatpush3.bf16.msra.mxu0 %v1030_v6  ;;  %593 = vmatpush3.bf16.msra.mxu1 %v1030_v6  ;;  %v155_v29 = vld [vmem:[#allocation10] sm:$0xff]  ;;  %v206_v40 = vld [vmem:[#allocation10 + $0x8] sm:$0xff]  ;;  %v213_v51 = vld [vmem:[#allocation8 + $0x10] sm:$0xff] }
  0x61   :  { %574 = vmatprep.subr.bf16.mxu0 %v918_v0  ;;  %594 = vmatprep.subr.bf16.mxu1 %v918_v0  ;;  %vm156_vm1 = vcmp.lt.f32.partialorder %v155_v29, 0.75  ;;  %vm207_vm4 = vcmp.lt.f32.partialorder %v206_v40, 0.75  ;;  %v257_v53 = vld [vmem:[#allocation10 + $0x10] sm:$0xff]  ;;  %v264_v2 = vld [vmem:[#allocation8 + $0x18] sm:$0xff] }
  0x62   :  { %vm258_vm7 = vcmp.lt.f32.partialorder %v257_v53, 0.75 }
  0x64   :  { %575 = vmatpush3.bf16.msra.mxu0 %v1036_v9  ;;  %595 = vmatpush3.bf16.msra.mxu1 %v1036_v9 }
  0x65   :  { %576 = vmatprep.subr.bf16.mxu0 %v918_v0  ;;  %596 = vmatprep.subr.bf16.mxu1 %v918_v0 }
  0x68   :  { %577 = vmatpush3.bf16.msra.mxu0 %v1042_v12  ;;  %597 = vmatpush3.bf16.msra.mxu1 %v1042_v12 }
  0x69   :  { %578 = vmatprep.subr.bf16.mxu0 %v918_v0  ;;  %598 = vmatprep.subr.bf16.mxu1 %v918_v0 }
  0x6c   :  { %579 = vmatpush3.bf16.msra.mxu0 %v1048_v15  ;;  %599 = vmatpush3.bf16.msra.mxu1 %v1048_v15 }
  0x6d   :  { %580 = vmatprep.subr.bf16.mxu0 %v918_v0  ;;  %600 = vmatprep.subr.bf16.mxu1 %v918_v0 }
  0x70   :  { %581 = vmatpush3.bf16.msra.mxu0 %v1054_v18  ;;  %601 = vmatpush3.bf16.msra.mxu1 %v1054_v18 }
  0x71   :  { %582 = vmatprep.subr.bf16.mxu0 %v918_v0  ;;  %602 = vmatprep.subr.bf16.mxu1 %v918_v0 }
  0x74   :  { %583 = vmatpush3.bf16.msra.mxu0 %v1060_v21  ;;  %603 = vmatpush3.bf16.msra.mxu1 %v1060_v21 }
  0x75   :  { %584 = vmatprep.subr.bf16.mxu0 %v918_v0  ;;  %604 = vmatprep.subr.bf16.mxu1 %v918_v0 }
  0x78   :  { %585 = vmatpush3.bf16.msra.mxu0 %v1066_v24  ;;  %605 = vmatpush3.bf16.msra.mxu1 %v1066_v24 }
  0x79   :  { %610 = vmatprep.subr.bf16.mxu0 %v918_v0  ;;  %630 = vmatprep.subr.bf16.mxu1 %v918_v0 }
  0x7b   :  { %587 = vmatmul.mubr.bf16.vlgmr.msra.gmra.mrb[0].mxu0 %v111_v26 }
  0x7c   :  { %611 = vmatpush3.bf16.msra.mxu0 %v1027_v4  ;;  %626 = vmatprep.mubr.msk.bf16.mxu0 %vm919_vm0, %v918_v0 }
  0x7d   :  { %612 = vmatprep.subr.bf16.mxu0 %v918_v0 }
  0x80   :  { %613 = vmatpush3.bf16.msra.mxu0 %v1030_v6 }
  0x81   :  { %614 = vmatprep.subr.bf16.mxu0 %v918_v0 }
  0x84   :  { %615 = vmatpush3.bf16.msra.mxu0 %v1036_v9 }
  0x85   :  { %616 = vmatprep.subr.bf16.mxu0 %v918_v0 }
  0x88   :  { %617 = vmatpush3.bf16.msra.mxu0 %v1042_v12 }
  0x89   :  { %618 = vmatprep.subr.bf16.mxu0 %v918_v0 }
  0x8c   :  { %619 = vmatpush3.bf16.msra.mxu0 %v1048_v15 }
  0x8d   :  { %620 = vmatprep.subr.bf16.mxu0 %v918_v0 }
  0x90   :  { %621 = vmatpush3.bf16.msra.mxu0 %v1054_v18 }
  0x91   :  { %622 = vmatprep.subr.bf16.mxu0 %v918_v0 }
  0x94   :  { %623 = vmatpush3.bf16.msra.mxu0 %v1060_v21 }
  0x95   :  { %624 = vmatprep.subr.bf16.mxu0 %v918_v0 }
  0x98   :  { %625 = vmatpush3.bf16.msra.mxu0 %v1066_v24 }
  0x99   :  { %720 = vmatprep.subr.bf16.mxu0 %v920_v49 }
 0x14e   :  { %v147_v28 = vpop.f32.mrb[0].mxu0 }
 0x14f   :  { %v148_v30 = vadd.f32 %v147_v28, %v112_v27  ;;  %v588_v31 = vpop.f32.mrb[1].mxu0 }
 0x150   :  { %v150_v32 = vpop.f32.mrb[2].mxu0 }
 0x151   :  { %v153_v33 = vmul.f32 %v148_v30, %v110_v25  ;;  %v589_v35 = vpop.f32.mrb[3].mxu0 }
 0x153   :  { %vm154_vm2 = vcmp.lt.f32.partialorder %v153_v33, 0.0 }
 0x154   :  { %vm157_vm3 = vmand %vm154_vm2, %vm156_vm1 }
 0x155   :  { %v159_v36 = vsel %vm157_vm3, %v158_v34, %v110_v25 }
 0x156   :  { %v160_v37 = vpack.c.bf16 %v159_v36, %v159_v36  ;;  %v209_v46 = vsub.f32 0.0, %v159_v36 }
 0x158   :  { %607 = vmatmul.mubr.bf16.vlgmr.msra.gmra.mrb[0].mxu1 %v160_v37 }
 0x159   :  { %631 = vmatpush3.bf16.msra.mxu1 %v1027_v4  ;;  %646 = vmatprep.mubr.msk.bf16.mxu1 %vm919_vm0, %v918_v0 }
 0x15a   :  { %632 = vmatprep.subr.bf16.mxu1 %v918_v0 }
 0x15d   :  { %633 = vmatpush3.bf16.msra.mxu1 %v1030_v6 }
 0x15e   :  { %634 = vmatprep.subr.bf16.mxu1 %v918_v0 }
 0x161   :  { %635 = vmatpush3.bf16.msra.mxu1 %v1036_v9 }
 0x162   :  { %636 = vmatprep.subr.bf16.mxu1 %v918_v0 }
 0x165   :  { %637 = vmatpush3.bf16.msra.mxu1 %v1042_v12 }
 0x166   :  { %638 = vmatprep.subr.bf16.mxu1 %v918_v0 }
 0x169   :  { %639 = vmatpush3.bf16.msra.mxu1 %v1048_v15 }
 0x16a   :  { %640 = vmatprep.subr.bf16.mxu1 %v918_v0 }
 0x16d   :  { %641 = vmatpush3.bf16.msra.mxu1 %v1054_v18 }
 0x16e   :  { %642 = vmatprep.subr.bf16.mxu1 %v918_v0 }
 0x171   :  { %643 = vmatpush3.bf16.msra.mxu1 %v1060_v21 }
 0x172   :  { %644 = vmatprep.subr.bf16.mxu1 %v918_v0 }
 0x175   :  { %645 = vmatpush3.bf16.msra.mxu1 %v1066_v24 }
 0x176   :  { %744 = vmatprep.subr.bf16.mxu1 %v920_v49 }
 0x22b   :  { %v197_v39 = vpop.f32.mrb[0].mxu1 }
 0x22c   :  { %v198_v41 = vadd.f32 %v197_v39, %v162_v38  ;;  %v608_v42 = vpop.f32.mrb[1].mxu1 }
 0x22d   :  { %v200_v43 = vpop.f32.mrb[2].mxu1 }
 0x22e   :  { %v203_v44 = vmul.f32 %v198_v41, %v159_v36  ;;  %v609_v45 = vpop.f32.mrb[3].mxu1 }
 0x230   :  { %vm204_vm5 = vcmp.lt.f32.partialorder %v203_v44, 0.0 }
 0x231   :  { %vm208_vm6 = vmand %vm204_vm5, %vm207_vm4 }
 0x232   :  { %v210_v47 = vsel %vm208_vm6, %v209_v46, %v159_v36 }
 0x233   :  { %v211_v48 = vpack.c.bf16 %v210_v47, %v210_v47  ;;  %v260_v59 = vsub.f32 0.0, %v210_v47 }
 0x235   :  { %627 = vmatmul.mubr.bf16.vlgmr.msra.gmra.mrb[4].mxu0 %v211_v48 }
 0x236   :  { %682 = vmatprep.mubr.msk.f32.mxu0 %vm919_vm0, %v918_v0  ;;  %722 = vmatpush3.bf16.msra.mxu0 %v1027_v4 }
 0x237   :  { %723 = vmatprep.subr.bf16.mxu0 %v920_v49 }
 0x23a   :  { %725 = vmatpush3.bf16.msra.mxu0 %v1030_v6 }
 0x23b   :  { %726 = vmatprep.subr.bf16.mxu0 %v920_v49 }
 0x23e   :  { %728 = vmatpush3.bf16.msra.mxu0 %v1036_v9 }
 0x23f   :  { %729 = vmatprep.subr.bf16.mxu0 %v920_v49 }
 0x242   :  { %731 = vmatpush3.bf16.msra.mxu0 %v1042_v12 }
 0x243   :  { %732 = vmatprep.subr.bf16.mxu0 %v920_v49 }
 0x246   :  { %734 = vmatpush3.bf16.msra.mxu0 %v1048_v15 }
 0x247   :  { %735 = vmatprep.subr.bf16.mxu0 %v920_v49 }
 0x24a   :  { %737 = vmatpush3.bf16.msra.mxu0 %v1054_v18 }
 0x24b   :  { %738 = vmatprep.subr.bf16.mxu0 %v920_v49 }
 0x24e   :  { %740 = vmatpush3.bf16.msra.mxu0 %v1060_v21 }
 0x24f   :  { %741 = vmatprep.subr.bf16.mxu0 %v920_v49 }
 0x252   :  { %743 = vmatpush3.bf16.msra.mxu0 %v1066_v24 }
 0x255   :  { %683 = vmatmul.mubr.f32.vlgmr.msra.gmra.mrb[8].mxu0 %v313_v50 }
 0x308   :  { %v248_v52 = vpop.f32.mrb[4].mxu0 }
 0x309   :  { %v249_v54 = vadd.f32 %v248_v52, %v213_v51  ;;  %v628_v55 = vpop.f32.mrb[5].mxu0 }
 0x30a   :  { %v251_v56 = vpop.f32.mrb[6].mxu0 }
 0x30b   :  { %v254_v57 = vmul.f32 %v249_v54, %v210_v47  ;;  %v629_v58 = vpop.f32.mrb[7].mxu0 }
 0x30d   :  { %vm255_vm8 = vcmp.lt.f32.partialorder %v254_v57, 0.0 }
 0x30e   :  { %vm259_vm9 = vmand %vm255_vm8, %vm258_vm7 }
 0x30f   :  { %v261_v60 = vsel %vm259_vm9, %v260_v59, %v210_v47 }
 0x310   :  { %v262_v61 = vpack.c.bf16 %v261_v60, %v261_v60  ;;  %v311_v10 = vsub.f32 0.0, %v261_v60 }
 0x312   :  { %647 = vmatmul.mubr.bf16.vlgmr.msra.gmra.mrb[4].mxu1 %v262_v61 }
 0x313   :  { %746 = vmatpush3.bf16.msra.mxu1 %v1027_v4  ;;  %717 = vmatprep.mubr.msk.f32.mxu1 %vm919_vm0, %v918_v0  ;;  %v308_v4 = vld [vmem:[#allocation10 + $0x18] sm:$0xff] }
 0x314   :  { %747 = vmatprep.subr.bf16.mxu1 %v920_v49  ;;  %vm309_vm11 = vcmp.lt.f32.partialorder %v308_v4, 0.75 }
 0x317   :  { %749 = vmatpush3.bf16.msra.mxu1 %v1030_v6 }
 0x318   :  { %750 = vmatprep.subr.bf16.mxu1 %v920_v49 }
 0x31b   :  { %752 = vmatpush3.bf16.msra.mxu1 %v1036_v9 }
 0x31c   :  { %753 = vmatprep.subr.bf16.mxu1 %v920_v49 }
 0x31f   :  { %755 = vmatpush3.bf16.msra.mxu1 %v1042_v12 }
 0x320   :  { %756 = vmatprep.subr.bf16.mxu1 %v920_v49 }
 0x323   :  { %758 = vmatpush3.bf16.msra.mxu1 %v1048_v15 }
 0x324   :  { %759 = vmatprep.subr.bf16.mxu1 %v920_v49 }
 0x327   :  { %761 = vmatpush3.bf16.msra.mxu1 %v1054_v18 }
 0x328   :  { %762 = vmatprep.subr.bf16.mxu1 %v920_v49  ;;  %v380_v62 = vpop.f32.mrb[8].mxu0 }
 0x329   :  { %v384_v63 = vmul.f32 %v380_v62, %v313_v50  ;;  %v684_v0 = vpop.f32.mrb[9].mxu0 }
 0x32b   :  { %764 = vmatpush3.bf16.msra.mxu1 %v1060_v21  ;;  %v386_v1 = vsel %vm385_vm10, %v384_v63, 0.0 }
 0x32c   :  { %765 = vmatprep.subr.bf16.mxu1 %v920_v49  ;;  %387 = vadd.xlane.f32.xlu0 %v386_v1 }
 0x32f   :  { %767 = vmatpush3.bf16.msra.mxu1 %v1066_v24 }
 0x3b9   :  { %v388_v12 = vpop.xlane.xlu0 %387 }
 0x3ba   :  { %v389_v16 = vrot.slane %v388_v12, 4 }
 0x3bc   :  { %v390_v17 = vadd.f32 %v389_v16, %v388_v12 }
 0x3be   :  { %v391_v18 = vrot.slane %v390_v17, 2 }
 0x3c0   :  { %v392_v19 = vadd.f32 %v391_v18, %v390_v17 }
 0x3c2   :  { %v393_v20 = vrot.slane %v392_v19, 1 }
 0x3c4   :  { %v394_v21 = vadd.f32 %v393_v20, %v392_v19 }
 0x3c6   :  { %768 = vpush %v394_v21 }
 0x3e5   :  { %v299_v3 = vpop.f32.mrb[4].mxu1 }
 0x3e6   :  { %v300_v5 = vadd.f32 %v299_v3, %v264_v2  ;;  %v648_v6 = vpop.f32.mrb[5].mxu1 }
 0x3e7   :  { %v302_v7 = vpop.f32.mrb[6].mxu1 }
 0x3e8   :  { %v305_v8 = vmul.f32 %v300_v5, %v261_v60  ;;  %v649_v9 = vpop.f32.mrb[7].mxu1 }
 0x3ea   :  { %vm306_vm12 = vcmp.lt.f32.partialorder %v305_v8, 0.0 }
 0x3eb   :  { %vm310_vm13 = vmand %vm306_vm12, %vm309_vm11 }
 0x3ec   :  { %v312_v11 = vsel %vm310_vm13, %v311_v10, %v261_v60 }
 0x3ed   :  { %718 = vmatmul.mubr.f32.vlgmr.msra.gmra.mrb[8].mxu1 %v312_v11 }
 0x3f7   :  { %s769_s4 = spop %768 }
 0x3f8   :  { %s396_s16 = smul.f32 0.25, %s769_s4 }
 0x4c0   :  { %v463_v13 = vpop.f32.mrb[8].mxu1 }
 0x4c1   :  { %v467_v14 = vmul.f32 %v463_v13, %v312_v11  ;;  %v719_v15 = vpop.f32.mrb[9].mxu1 }
 0x4c3   :  { %468 = vadd.xlane.f32.xlu0 %v467_v14 }
 0x550   :  { %v469_v22 = vpop.xlane.xlu0 %468 }
 0x551   :  { %v470_v23 = vrot.slane %v469_v22, 4 }
 0x553   :  { %v471_v24 = vadd.f32 %v470_v23, %v469_v22 }
 0x555   :  { %v472_v25 = vrot.slane %v471_v24, 2 }
 0x557   :  { %v473_v26 = vadd.f32 %v472_v25, %v471_v24 }
 0x559   :  { %v474_v27 = vrot.slane %v473_v26, 1 }
 0x55b   :  { %v475_v28 = vadd.f32 %v474_v27, %v473_v26 }
 0x55d   :  { %770 = vpush %v475_v28 }
 0x58e   :  { %s771_s17 = spop %770 }
 0x58f   :  { %s477_s27 = smul.f32 0.125, %s771_s17 }
 0x591   :  { %s478_s3 = ssub.f32 %s477_s27, %s396_s16 }
 0x593   :  { %s479_s28 = smul.f32 0.0078125, %s478_s3 }
 0x595   :  { %p480_p12 = scmp.lt.f32.partialorder %s479_s28, 0.0 }
 0x597   :  { %s1148_s28 = smov (%p480_p12, %s479_s28), 0.0 }
 0x598   :  { %483 = sst [smem:[#allocation11]] %s1148_s28 }
 0x599   :  { %902 = shalt.err (!%p899_p1)
}
 0x59a   :  { %s921_s12 = smov [#allocation11]  }
 0x59b   :  { %491 = dma.smem_to_hbm %s921_s12, 16, %s1146_s5, [#allocation4]  }
 0x59c   :  { %909 = dma.done.wait [#allocation4], 16  }
 0x59d   :  { %910 = vsyncadd [#allocation4], 4294967280 }
 0x59e   :  { %495 = sfence }
 0x59f   :  { %496 = vsyncpa [#allocation3], 1 }
 0x5a0   :  { %497 = vsyncpa [#allocation6], 1 }
 0x5a1   :  { %498 = vsyncpa [#allocation9], 1 }
 0x5a2   :  { %499 = vsyncpa [#allocation4], 1 }

</bundles_post_ra>
